<compile_context>
chip_gen: v7x
topology: tpu7x:2x2x1
jax: 0.10.0
libtpu: 0.0.40
codegen_flags: <defaults>
</compile_context>

<pallas_src>
import functools

import jax
import jax.numpy as jnp
from jax import lax
from jax.experimental import pallas as pl
from jax.experimental.pallas import tpu as pltpu

LANE = 128                      # lane width: channel dims padded to multiples
COMPUTE_DTYPE = jnp.bfloat16    # MXU operand dtype (fp32 accumulation)
VMEM_LIMIT = 40 * 1024 * 1024   # <= 40 MiB scoped VMEM (headroom on v7x 64 MiB)
EXPANSION = 4


# ----------------------------------------------------------------------------
# small helpers
# ----------------------------------------------------------------------------
def _round_up(x, m):
    return ((x + m - 1) // m) * m


def _pick_tm(M, tm_max=512, target_steps=8):
    """Row tile for the flat 1x1-conv matmuls: multiple of 16 (bf16 sublane
    packing), aiming for ~target_steps grid steps (keeps both v7x TensorCores
    fed) with a cap on the per-step working set.  tm need not divide M: the
    grid uses cdiv and the partial last block is clipped.
    # TODO(synk): generation-aware tuning (v5e/v6e prefer one big tile, v7x
    # prefers many parallel steps) via pltpu.get_tpu_info().
    """
    tm = _round_up(max(pl.cdiv(M, target_steps), 16), 16)
    return min(tm, tm_max)


def _pick_tr(Ho, Wo, Cout, acc_budget_bytes=128 * 1024):
    """Output-row tile for the 3x3 conv: bounds the fp32 accumulator to
    ~acc_budget_bytes (vreg/small-VMEM friendly instead of a multi-MB spilled
    slab) while keeping the out-block sublane dim (tr*Wo) 8-aligned so stores
    are lane-dense and unmasked."""
    tr = max(1, min(Ho, acc_budget_bytes // (Wo * Cout * 4)))
    if tr >= Ho:
        return Ho
    while tr > 1 and (tr * Wo) % 8 != 0:
        tr -= 1
    if (tr * Wo) % 8 != 0:
        return Ho            # single block per image; full-dim block is legal
    return tr


def _pad_mat(w, kp, np_):
    K, N = w.shape
    return w if (kp == K and np_ == N) else jnp.pad(w, ((0, kp - K), (0, np_ - N)))


def _pad_vec(b, np_):
    return b if np_ == b.shape[0] else jnp.pad(b, (0, np_ - b.shape[0]))


def _pad_taps(w, kp, np_):
    _, K, N = w.shape
    if kp == K and np_ == N:
        return w
    return jnp.pad(w, ((0, 0), (0, kp - K), (0, np_ - N)))


def _pad_channels_nhwc(x, cp):
    C = x.shape[-1]
    return x if cp == C else jnp.pad(x, ((0, 0), (0, 0), (0, 0), (0, cp - C)))


def fold_bn(w2d, bn_params, eps=1e-5):
    """Fold eval-mode BN into a (K, Cout) weight matrix and an fp32 bias."""
    gamma, beta, mean, var = bn_params
    scale = gamma / jnp.sqrt(var + eps)
    return w2d * scale[None, :], beta - mean * scale


# ----------------------------------------------------------------------------
# fused matmul kernels: out = [relu]( x@w + b [+ residual] [+ x2@w2] )
# Activations are cast to bf16 INSIDE the kernel; residual is added in fp32.
# ----------------------------------------------------------------------------
def _mm_kernel(x_ref, w_ref, b_ref, o_ref, *, relu):
    x = x_ref[...].astype(COMPUTE_DTYPE)
    acc = jnp.dot(x, w_ref[...], preferred_element_type=jnp.float32)
    acc = acc + b_ref[...]
    if relu:
        acc = jnp.maximum(acc, 0.0)
    o_ref[...] = acc.astype(o_ref.dtype)


def _mm_res_kernel(x_ref, w_ref, b_ref, r_ref, o_ref, *, relu):
    x = x_ref[...].astype(COMPUTE_DTYPE)
    acc = jnp.dot(x, w_ref[...], preferred_element_type=jnp.float32)
    acc = acc + b_ref[...] + r_ref[...].astype(jnp.float32)   # fp32 shortcut add
    if relu:
        acc = jnp.maximum(acc, 0.0)
    o_ref[...] = acc.astype(o_ref.dtype)


def _mm_dual_kernel(x_ref, w_ref, b_ref, x2_ref, w2_ref, o_ref, *, relu):
    # main path + projection-shortcut path fused in one kernel (two MXU dots)
    x = x_ref[...].astype(COMPUTE_DTYPE)
    x2 = x2_ref[...].astype(COMPUTE_DTYPE)
    acc = jnp.dot(x, w_ref[...], preferred_element_type=jnp.float32)
    acc = acc + jnp.dot(x2, w2_ref[...], preferred_element_type=jnp.float32)
    acc = acc + b_ref[...]
    if relu:
        acc = jnp.maximum(acc, 0.0)
    o_ref[...] = acc.astype(o_ref.dtype)


def fused_matmul(x, w, b, *, residual=None, x2=None, w2=None, relu=True,
                 out_dtype=COMPUTE_DTYPE, tm_max=512):
    """out = [relu]( x@w + b [+ residual] [+ x2@w2] ), bf16 MXU, fp32 accum.

    x:(M,K)  w:(K,N) bf16  b:(N,) fp32  residual:(M,N)  x2:(M,K2)  w2:(K2,N).
    No row padding / pre-casting of activations in XLA: grid = cdiv(M, tm)
    with a clipped partial last block; casts happen in-kernel.
    """
    M, K = x.shape
    N = w.shape[1]
    tm = _pick_tm(M, tm_max)
    grid = (pl.cdiv(M, tm),)
    b2 = b.astype(jnp.float32).reshape(1, N)

    # TODO(synk): pipeline_mode=pl.Buffered(1) on the grid-invariant weight /
    # bias specs would halve their VMEM footprint (matters most on v7x).
    in_specs = [
        pl.BlockSpec((tm, K), lambda i: (i, 0)),   # activation tile
        pl.BlockSpec((K, N), lambda i: (0, 0)),    # resident folded weight
        pl.BlockSpec((1, N), lambda i: (0, 0)),    # folded BN bias (fp32)
    ]
    args = [x, w, b2]
    flops = 2 * M * K * N
    nbytes = (x.size * x.dtype.itemsize + w.size * 2 + b2.size * 4
              + M * N * jnp.dtype(out_dtype).itemsize)

    if residual is not None:
        in_specs.append(pl.BlockSpec((tm, N), lambda i: (i, 0)))
        args.append(residual)
        nbytes += residual.size * residual.dtype.itemsize
        kernel = functools.partial(_mm_res_kernel, relu=relu)
    elif x2 is not None:
        K2 = x2.shape[1]
        in_specs.append(pl.BlockSpec((tm, K2), lambda i: (i, 0)))
        in_specs.append(pl.BlockSpec((K2, N), lambda i: (0, 0)))
        args += [x2, w2]
        flops += 2 * M * K2 * N
        nbytes += x2.size * x2.dtype.itemsize + w2.size * 2
        kernel = functools.partial(_mm_dual_kernel, relu=relu)
    else:
        kernel = functools.partial(_mm_kernel, relu=relu)

    return pl.pallas_call(
        kernel,
        out_shape=jax.ShapeDtypeStruct((M, N), out_dtype),
        grid_spec=pltpu.PrefetchScalarGridSpec(
            num_scalar_prefetch=0,
            grid=grid,
            in_specs=in_specs,
            out_specs=pl.BlockSpec((tm, N), lambda i: (i, 0)),
        ),
        compiler_params=pltpu.CompilerParams(
            dimension_semantics=("parallel",),
            vmem_limit_bytes=VMEM_LIMIT),
        cost_estimate=pl.CostEstimate(
            flops=int(flops), transcendentals=0, bytes_accessed=int(nbytes)),
    )(*args)


# ----------------------------------------------------------------------------
# 3x3 conv (pad=1, stride s) + folded BN + relu
# grid = (image, output-row-block); 9 accumulating MXU dots per block.
# ----------------------------------------------------------------------------
def _conv3x3_kernel(x_ref, w_ref, b_ref, o_ref, *, stride, tr, Wo):
    """x_ref: (1, Hq, s, Wq, s*C) stride-phase-factored, spatially padded image
    (VMEM-resident across the row-block axis).  w_ref: (9, C, Cout) tap-major.
    b_ref: (1, Cout) fp32.  o_ref: (1, tr*Wo, Cout) lane-dense output rows."""
    s = stride
    C = w_ref.shape[1]
    Cout = w_ref.shape[2]
    r0 = pl.program_id(1) * tr                       # first output row of block
    acc = jnp.zeros((tr * Wo, Cout), jnp.float32)
    # TODO(synk): on v6e/v7x fuse the 3 kx taps of each row into one K=3*C dot
    # to fill the 256-deep MXU; kept as 9 K=C dots (native on v5e's 128 MXU).
    for ky in range(3):
        for kx in range(3):
            # output (r, c) reads padded input (r*s + ky, c*s + kx); in the
            # phase layout that is (r + ky//s, ky%s, c + kx//s, (kx%s)*C : +C).
            xt = x_ref[0,
                       pl.ds(r0 + ky // s, tr),
                       ky % s,
                       pl.ds(kx // s, Wo),
                       pl.ds((kx % s) * C, C)]
            xt = xt.reshape(tr * Wo, C).astype(COMPUTE_DTYPE)
            acc = acc + jnp.dot(xt, w_ref[ky * 3 + kx],
                                preferred_element_type=jnp.float32)
    acc = acc + b_ref[...]
    acc = jnp.maximum(acc, 0.0)
    o_ref[...] = acc.reshape(1, tr * Wo, Cout).astype(o_ref.dtype)


def conv3x3_bn_relu(h, w_taps, bias, stride, out_dtype=COMPUTE_DTYPE):
    """h:(N,H,W,C) (C lane-aligned) -> (N, Ho*Wo, Cout).  w_taps:(9,C,Cout).

    The wrapper does ONE spatial pad of h and a FREE metadata reshape into the
    stride-phase layout (N, Hq, s, Wq, s*C); there is no per-phase stack and no
    im2col materialization in HBM.
    # TODO(synk): the spatial pad still costs one HBM round trip of h; avoiding
    # it needs element-offset output indexing from conv1 (or in-kernel masks).
    """
    N, H, W, C = h.shape
    Cout = w_taps.shape[-1]
    s = stride
    Ho = (H - 1) // s + 1               # k=3, pad=1, stride=s
    Wo = (W - 1) // s + 1
    halo = 2 // s                       # per-phase halo: 2 (s=1), 1 (s=2)

    tr = _pick_tr(Ho, Wo, Cout)
    n_rb = pl.cdiv(Ho, tr)
    Hq = n_rb * tr + halo               # covers the (possibly clipped) last block
    Wq = Wo + halo

    # conv padding=1 plus trailing pad so the phase layout is rectangular.
    hp = jnp.pad(h, ((0, 0), (1, s * Hq - H - 1), (1, s * Wq - W - 1), (0, 0)))
    hp = hp.reshape(N, Hq, s, Wq, s * C)            # pure metadata reshape
    wb = w_taps.astype(COMPUTE_DTYPE)
    b2 = bias.astype(jnp.float32).reshape(1, Cout)

    flops = 2 * N * Ho * Wo * 9 * C * Cout
    nbytes = (hp.size * 2 + wb.size * 2 + b2.size * 4
              + N * Ho * Wo * Cout * jnp.dtype(out_dtype).itemsize)

    kernel = functools.partial(_conv3x3_kernel, stride=s, tr=tr, Wo=Wo)
    return pl.pallas_call(
        kernel,
        out_shape=jax.ShapeDtypeStruct((N, Ho * Wo, Cout), out_dtype),
        grid_spec=pltpu.PrefetchScalarGridSpec(
            num_scalar_prefetch=0,
            grid=(N, n_rb),                          # row-block axis innermost
            in_specs=[
                # whole padded image: index_map ignores rb -> stays resident
                pl.BlockSpec((1, Hq, s, Wq, s * C),
                             lambda n, rb: (n, 0, 0, 0, 0)),
                pl.BlockSpec((9, C, Cout), lambda n, rb: (0, 0, 0)),
                pl.BlockSpec((1, Cout), lambda n, rb: (0, 0)),
            ],
            out_specs=pl.BlockSpec((1, tr * Wo, Cout), lambda n, rb: (n, rb, 0)),
        ),
        compiler_params=pltpu.CompilerParams(
            dimension_semantics=("parallel", "parallel"),
            vmem_limit_bytes=VMEM_LIMIT),
        cost_estimate=pl.CostEstimate(
            flops=int(flops), transcendentals=0, bytes_accessed=int(nbytes)),
    )(hp, wb, b2)


# ----------------------------------------------------------------------------
# Parameters (deterministic, synthetic)
# ----------------------------------------------------------------------------
def init_bottleneck_params(key, in_channels, out_channels, downsample):
    ks = jax.random.split(key, 8)

    def conv_w(k, co, ci, kh, kw):
        fan_in = ci * kh * kw
        return jax.random.normal(k, (co, ci, kh, kw), jnp.float32) / jnp.sqrt(fan_in)

    def bn_p(k, c):
        k1, k2, k3, k4 = jax.random.split(k, 4)
        gamma = 1.0 + 0.1 * jax.random.normal(k1, (c,), jnp.float32)
        beta = 0.1 * jax.random.normal(k2, (c,), jnp.float32)
        mean = 0.1 * jax.random.normal(k3, (c,), jnp.float32)
        var = 1.0 + 0.1 * jax.random.uniform(k4, (c,), jnp.float32)
        return (gamma, beta, mean, var)

    cexp = EXPANSION * out_channels
    params = {
        "w1": conv_w(ks[0], out_channels, in_channels, 1, 1),
        "bn1": bn_p(ks[1], out_channels),
        "w2": conv_w(ks[2], out_channels, out_channels, 3, 3),
        "bn2": bn_p(ks[3], out_channels),
        "w3": conv_w(ks[4], cexp, out_channels, 1, 1),
        "bn3": bn_p(ks[5], cexp),
    }
    if downsample:
        params["wd"] = conv_w(ks[6], cexp, in_channels, 1, 1)
        params["bnd"] = bn_p(ks[7], cexp)
    return params


# ----------------------------------------------------------------------------
# Bottleneck forward (NHWC core + thin NCHW wrapper), hot paths in Pallas
# ----------------------------------------------------------------------------
def bottleneck_forward_nhwc(x, params, stride=1):
    N, H, W, Cin = x.shape
    Cmid = params["w1"].shape[0]
    Cout = params["w3"].shape[0]
    # Channel lane-padding is a no-op at real ResNet widths (already 128-aligned).
    Cin_p, Cmid_p, Cout_p = (_round_up(c, LANE) for c in (Cin, Cmid, Cout))

    # ---- fold eval-mode BN; zero-pad channel dims (exact) -------------------
    w1f, b1 = fold_bn(params["w1"][:, :, 0, 0].T, params["bn1"])
    w1f, b1 = _pad_mat(w1f, Cin_p, Cmid_p), _pad_vec(b1, Cmid_p)

    w2f, b2 = fold_bn(
        jnp.transpose(params["w2"], (2, 3, 1, 0)).reshape(9 * Cmid, Cmid),
        params["bn2"])
    w2f = _pad_taps(w2f.reshape(9, Cmid, Cmid), Cmid_p, Cmid_p)
    b2 = _pad_vec(b2, Cmid_p)

    w3f, b3 = fold_bn(params["w3"][:, :, 0, 0].T, params["bn3"])
    w3f, b3 = _pad_mat(w3f, Cmid_p, Cout_p), _pad_vec(b3, Cout_p)

    xpad = _pad_channels_nhwc(x, Cin_p)          # fp32, cast happens in-kernel
    M = N * H * W

    # conv1 (1x1) + bn1 + relu
    h = fused_matmul(xpad.reshape(M, Cin_p), w1f.astype(COMPUTE_DTYPE), b1,
                     relu=True)
    h = h.reshape(N, H, W, Cmid_p)

    # conv2 (3x3, stride, pad=1) + bn2 + relu
    h2 = conv3x3_bn_relu(h, w2f, b2, stride)     # (N, Ho*Wo, Cmid_p) bf16
    Ho = (H - 1) // stride + 1
    Wo = (W - 1) // stride + 1
    Mo = N * Ho * Wo
    h2 = h2.reshape(Mo, Cmid_p)

    # conv3 (1x1) + bn3 + shortcut + relu — fully fused, bf16 writeback
    if "wd" in params:
        wdf, bd = fold_bn(params["wd"][:, :, 0, 0].T, params["bnd"])
        wdf, bd = _pad_mat(wdf, Cin_p, Cout_p), _pad_vec(bd, Cout_p)
        xd = xpad[:, ::stride, ::stride, :].reshape(Mo, Cin_p)
        out = fused_matmul(h2, w3f.astype(COMPUTE_DTYPE), b3 + bd,
                           x2=xd, w2=wdf.astype(COMPUTE_DTYPE), relu=True)
    else:
        # identity shortcut (requires Cin == expansion*out_channels, stride == 1);
        # residual stays fp32 and is added after the MXU accumulation.
        ident = xpad.reshape(M, Cout_p)
        out = fused_matmul(h2, w3f.astype(COMPUTE_DTYPE), b3,
                           residual=ident, relu=True)

    out = out.reshape(N, Ho, Wo, Cout_p)
    return out[..., :Cout]


def bottleneck_forward(x_nchw, params, stride=1):
    x = jnp.transpose(x_nchw, (0, 2, 3, 1))            # NHWC
    out = bottleneck_forward_nhwc(x, params, stride)
    return jnp.transpose(out, (0, 3, 1, 2))            # back to NCHW


# ----------------------------------------------------------------------------
# Pure-JAX reference (eval-mode BN) for correctness check
# ----------------------------------------------------------------------------
def reference_forward(x, params, stride):
    def conv(x, w, s, pad):
        return lax.conv_general_dilated(
            x, w, (s, s), pad, dimension_numbers=("NCHW", "OIHW", "NCHW"))

    def bn(x, p, eps=1e-5):
        gamma, beta, mean, var = p
        scale = gamma / jnp.sqrt(var + eps)
        return x * scale[None, :, None, None] + (beta - mean * scale)[None, :, None, None]

    i = x
    h = jax.nn.relu(bn(conv(x, params["w1"], 1, "VALID"), params["bn1"]))
    h = jax.nn.relu(bn(conv(h, params["w2"], stride, [(1, 1), (1, 1)]), params["bn2"]))
    h = bn(conv(h, params["w3"], 1, "VALID"), params["bn3"])
    if "wd" in params:
        i = bn(conv(i, params["wd"], stride, "VALID"), params["bnd"])
    return jax.nn.relu(h + i)


if __name__ == "__main__":
    key = jax.random.PRNGKey(0)
    kx1, kp1, kx2, kp2 = jax.random.split(key, 4)

    # tolerance sized for bf16 matmul operands + bf16 writeback (fp32 accum)
    RTOL = ATOL = 5e-2

    # --- config 1: downsampling bottleneck (stride 2, projection shortcut) ---
    in_c, out_c, stride = 4, 4, 2
    x1 = jax.random.normal(kx1, (2, in_c, 16, 16), jnp.float32)
    p1 = init_bottleneck_params(kp1, in_c, out_c, downsample=True)
    y1 = jax.block_until_ready(bottleneck_forward(x1, p1, stride=stride))
    r1 = reference_forward(x1, p1, stride)
    assert y1.shape == r1.shape, (y1.shape, r1.shape)
    assert jnp.allclose(y1, r1, rtol=RTOL, atol=ATOL), \
        float(jnp.max(jnp.abs(y1.astype(jnp.float32) - r1)))

    # --- config 2: identity bottleneck (stride 1, no projection) ---
    in_c2, out_c2 = 16, 4          # in_channels == expansion*out_channels
    x2 = jax.random.normal(kx2, (2, in_c2, 16, 16), jnp.float32)
    p2 = init_bottleneck_params(kp2, in_c2, out_c2, downsample=False)
    y2 = jax.block_until_ready(bottleneck_forward(x2, p2, stride=1))
    r2 = reference_forward(x2, p2, 1)
    assert y2.shape == r2.shape, (y2.shape, r2.shape)
    assert jnp.allclose(y2, r2, rtol=RTOL, atol=ATOL), \
        float(jnp.max(jnp.abs(y2.astype(jnp.float32) - r2)))

    print("KERNEL_OK")
</pallas_src>

<mosaic_0001>
module attributes {stable_mosaic.version = 11 : i64} {
  func.func @_mm_kernel(%arg0: i32, %arg1: memref<64x128xf32, #tpu.memory_space<vmem>>, %arg2: memref<128x128xbf16, #tpu.memory_space<vmem>>, %arg3: memref<1x128xf32, #tpu.memory_space<vmem>>, %arg4: memref<64x128xbf16, #tpu.memory_space<vmem>>) attributes {dimension_semantics = [#tpu.dimension_semantics<parallel>], iteration_bounds = array<i64: 8>, scalar_prefetch = 0 : i64, scratch_operands = 0 : i64, tpu.core_type = #tpu.core_type<tc>, window_params = [{transform_indices = @transform_0, window_bounds = array<i64: 64, 128>}, {pipeline_mode = #tpu.pipeline_mode<synchronous>, transform_indices = @transform_1, window_bounds = array<i64: 128, 128>}, {pipeline_mode = #tpu.pipeline_mode<synchronous>, transform_indices = @transform_2, window_bounds = array<i64: 1, 128>}, {transform_indices = @transform_3, window_bounds = array<i64: 64, 128>}]} {
    %c0 = arith.constant 0 : index
    %c0_0 = arith.constant 0 : index
    %0 = vector.load %arg1[%c0, %c0_0] : memref<64x128xf32, #tpu.memory_space<vmem>>, vector<64x128xf32>
    %1 = arith.truncf %0 : vector<64x128xf32> to vector<64x128xbf16>
    %c0_1 = arith.constant 0 : index
    %c0_2 = arith.constant 0 : index
    %2 = vector.load %arg2[%c0_1, %c0_2] : memref<128x128xbf16, #tpu.memory_space<vmem>>, vector<128x128xbf16>
    %cst = arith.constant dense<0.000000e+00> : vector<64x128xf32>
    %3 = tpu.matmul %1, %2, %cst {dimension_numbers = #tpu.dot_dimension_numbers<[1], [0], [0], [1], [0, 0, 1, 1], [], []>} : vector<64x128xbf16>, vector<128x128xbf16>, vector<64x128xf32> -> vector<64x128xf32>
    %c0_3 = arith.constant 0 : index
    %c0_4 = arith.constant 0 : index
    %4 = vector.load %arg3[%c0_3, %c0_4] : memref<1x128xf32, #tpu.memory_space<vmem>>, vector<1x128xf32>
    %5 = vector.broadcast %4 : vector<1x128xf32> to vector<64x128xf32>
    %6 = arith.addf %3, %5 : vector<64x128xf32>
    %cst_5 = arith.constant 0.000000e+00 : f32
    %7 = vector.broadcast %cst_5 : f32 to vector<64x128xf32>
    %8 = arith.maximumf %6, %7 : vector<64x128xf32>
    %9 = arith.truncf %8 : vector<64x128xf32> to vector<64x128xbf16>
    %c0_6 = arith.constant 0 : index
    %c0_7 = arith.constant 0 : index
    %10 = vector.load %arg4[%c0_6, %c0_7] : memref<64x128xbf16, #tpu.memory_space<vmem>>, vector<64x128xbf16>
    tpu.vector_store %arg4[%c0_6, %c0_7], %9 {strides = array<i32>} : memref<64x128xbf16, #tpu.memory_space<vmem>>, vector<64x128xbf16>,
    return
  }
  func.func @transform_0(%arg0: i32) -> (i32, i32) {
    %c0_i32 = arith.constant 0 : i32
    %c0_i32_0 = arith.constant 0 : i32
    return %arg0, %c0_i32 : i32, i32
  }
  func.func @transform_1(%arg0: i32) -> (i32, i32) {
    %c0_i32 = arith.constant 0 : i32
    %c0_i32_0 = arith.constant 0 : i32
    %c0_i32_1 = arith.constant 0 : i32
    return %c0_i32, %c0_i32_0 : i32, i32
  }
  func.func @transform_2(%arg0: i32) -> (i32, i32) {
    %c0_i32 = arith.constant 0 : i32
    %c0_i32_0 = arith.constant 0 : i32
    %c0_i32_1 = arith.constant 0 : i32
    return %c0_i32, %c0_i32_0 : i32, i32
  }
  func.func @transform_3(%arg0: i32) -> (i32, i32) {
    %c0_i32 = arith.constant 0 : i32
    %c0_i32_0 = arith.constant 0 : i32
    return %arg0, %c0_i32 : i32, i32
  }
}

</mosaic_0001>

<bundles_post_ra>
// kernel: tpu_custom_call.1
= control target key start
LH: loop header
LB: loop body
LE: loop exit
PB: predicated region body
PF: predicated region fallthrough
CT: control target
= control target key end

     0   :  { %8 = vsyncpa [#allocation3], 0  ;;  %s1054_s0 = inlined_call_operand.hbm [shape: f32[512,128], index: 0, kind: input, shape index: {}]   ;;  %s1055_s1 = inlined_call_operand.hbm [shape: bf16[128,128], index: 1, kind: input, shape index: {}]   ;;  %s1056_s2 = inlined_call_operand.vmem [shape: f32[1,128], index: 2, kind: input, shape index: {}]   ;;  %s1057_s3 = inlined_call_operand.hbm [shape: bf16[512,128], index: 3, kind: output, shape index: {}]  }
   0x1   :  { %10 = vsyncpa [#allocation3 + $0x1], 0 }
   0x2   :  { %11 = vsyncpa [#allocation6], 0 }
   0x3   :  { %12 = vsyncpa [#allocation4], 0 }
   0x4   :  { %14 = vsyncpa [#allocation4 + $0x1], 0  ;;  %s848_s12 = smov 0   ;;  %s850_s13 = smov 0  }
   0x5   :  { %s852_s14 = smov 0   ;;  %s854_s15 = smov 0  }
   0x6 LB: > { %s869_s16 = sadd.s32 4294967295, %s817_s15   ;;  %s500_s17 = sadd.s32 4294967294, %s817_s15   ;;  %s817_s15 = sphi %s854_s15, %s1076_s15   ;;  %s813_s14 = sphi %s852_s14, %s1075_s14   ;;  %s809_s13 = sphi %s850_s13, %s1074_s13   ;;  %s805_s12 = sphi %s848_s12, %s1073_s12  }
   0x7   : > { %p40_p0 = scmp.ne.s32.totalorder %s809_s13, %s805_s12  ;;  %p1058_p1 = scmp.eq.s32.totalorder %s869_s16, 0 }
   0x8   : > { %p112_p3 = scmp.eq.s32.totalorder %s500_s17, 7  ;;  %p501_p5 = scmp.ge.s32.totalorder %s817_s15, 1 }
   0x9   : > { %p878_p4 = por %p1058_p1, %p40_p0  ;;  %p119_p7 = scmp.lt.s32.totalorder %s817_s15, 9 }
   0xa   : > { %p883_p6 = por %p112_p3, %p40_p0  ;;  %s819_s21 = smov [#allocation5]  }
   0xb   : > { %s1061_s18 = scalar_select %p878_p4, 1, 0 }
   0xc   : > { %s1062_s19 = scalar_select %p883_p6, 1, 0 }
   0xd   : > { %p888_p8 = pnand %p501_p5, %p119_p7  ;;  %s131_s22 = sshll.u32 %s819_s21, 4  ;;  %s132_s22 = int_to_ptr.vmem [resolvable:$true] %s131_s22 }
   0xe   : > { %s901_s24 = sadd.s32 1, %s817_s15   ;;  %s27_s25 = sadd.s32 1, %s813_s14 }
   0xf   : > { %s1063_s20 = scalar_select %p888_p8, 1, 0 }
  0x10   : > { %p626_p9 = pneg %p888_p8  ;;  %s24_s26 = ssub.s32 %s817_s15, %s901_s24 }
  0x11   : > { %s689_s29 = scalar_lea.hbm %s1055_s1, 1024 }
  0x12   : > { %p896_p10 = pnand %p626_p9, %p1058_p1  ;;  %p690_p11 = scmp.ne.s32.totalorder %s1055_s1, %s689_s29 }
  0x13   : > { %p696_p3 = scmp.lt.u32.totalorder %s689_s29, %s1055_s1 }
  0x14   : > { %p691_p12 = pneg %p896_p10 }
  0x16   : > { %p692_p13 = pnand %p691_p12, %p690_p11 }
  0x18   : > { %p693_p0 = pneg %p692_p13 }
  0x1a   : > { %p698_p5 = pnand %p696_p3, %p693_p0 }
  0x1c   : > { %701 = shalt.err (!%p698_p5)
}
  0x1d   : > { %s702_s7 = scalar_lea.vmem %s132_s22, 1024  ;;  %p710_p2 = scmp.lt.s32.totalorder %s132_s22, %s132_s22 }
  0x1e   : > { %p703_p7 = scmp.ne.s32.totalorder %s132_s22, %s702_s7  ;;  %p711_p6 = scmp.lt.s32.totalorder %s702_s7, %s702_s7 }
  0x20   : > { %p705_p9 = pnand %p703_p7, %p691_p12  ;;  %p712_p4 = por %p711_p6, %p710_p2 }
  0x22   : > { %p706_p1 = pneg %p705_p9 }
  0x24   : > { %p713_p8 = pnand %p712_p4, %p706_p1 }
  0x26   : > { %716 = shalt.err (!%p713_p8)
}
  0x27   : > { %s820_s8 = smov 64   ;;  %s821_s9 = smov 4  }
  0x28   : > { %629 = dma.hbm_to_vmem [thread:$0]  (!%p896_p10), %s1055_s1, 1024, %s132_s22, [#allocation6], %s820_s8, %s820_s8, %s821_s9  }
  0x29   : > { %p25_p11 = scmp.eq.s32.totalorder %s24_s26, 0  ;;  %p34_p2 = scmp.ne.s32.totalorder %s813_s14, %s809_s13 }
  0x2a   : > { %p35_p1 = scmp.eq.s32.totalorder %s817_s15, 0  ;;  %p639_p4 = scmp.lt.s32.totalorder %s817_s15, 8 }
  0x2b   : > { %s927_s17 = scalar_select %p25_p11, %s813_s14, %s27_s25  }
  0x2c   : > { %p36_p6 = por %p35_p1, %p34_p2  ;;  %p1065_p8 = scmp.eq.s32.totalorder %s869_s16, 7 }
  0x2d   : > { %s148_s27 = sand.u32 1, %s813_s14   ;;  %s533_s28 = sshll.u32 %s817_s15, 10 }
  0x2e   : > { %p931_p12 = por %p1065_p8, %p34_p2  ;;  %s504_s29 = sshll.u32 %s148_s27, 6 }
  0x2f   : > { %s940_s4 = scalar_lea.hbm %s1054_s0, %s533_s28  ;;  %s152_s22 = scalar_lea.vmem [#allocation2], %s504_s29 }
  0x30   : > { %s159_s25 = sshll.u32 %s152_s22, 4  ;;  %p942_p10 = pnand %p639_p4, %p36_p6  ;;  %s946_s25 = int_to_ptr.vmem [resolvable:$true] %s159_s25 }
  0x31   : > { %s948_s5 = scalar_lea.sflag [#allocation3], %s148_s27  ;;  %s717_s6 = scalar_lea.hbm %s940_s4, 1024 }
  0x32   : > { %p718_p13 = scmp.ne.s32.totalorder %s940_s4, %s717_s6  ;;  %p719_p0 = pneg %p942_p10 }
  0x33   : > { %s722_s9 = scalar_lea.hbm %s1054_s0, 8192  ;;  %p723_p7 = scmp.lt.u32.totalorder %s940_s4, %s1054_s0 }
  0x34   : > { %p720_p3 = pnand %p719_p0, %p718_p13  ;;  %p724_p9 = scmp.lt.u32.totalorder %s722_s9, %s717_s6 }
  0x35   : > { %p726_p2 = scmp.lt.u32.totalorder %s717_s6, %s940_s4 }
  0x36   : > { %p721_p5 = pneg %p720_p3  ;;  %p725_p11 = por %p724_p9, %p723_p7 }
  0x38   : > { %p727_p1 = por %p726_p2, %p725_p11 }
  0x3a   : > { %p728_p4 = pnand %p727_p1, %p721_p5 }
  0x3c   : > { %731 = shalt.err (!%p728_p4)
}
  0x3d   : > { %s732_s27 = scalar_lea.vmem %s946_s25, 1024  ;;  %s822_s28 = smov [#allocation2]  }
  0x3e   : > { %p733_p6 = scmp.ne.s32.totalorder %s946_s25, %s732_s27  ;;  %s737_s29 = sshll.u32 %s822_s28, 4  ;;  %s738_s29 = int_to_ptr.vmem [resolvable:$false] %s737_s29 }
  0x3f   : > { %s739_s23 = scalar_lea.vmem %s738_s29, 2048  ;;  %p740_p3 = scmp.lt.s32.totalorder %s946_s25, %s738_s29 }
  0x40   : > { %p735_p8 = pnand %p733_p6, %p719_p0  ;;  %p741_p7 = scmp.lt.s32.totalorder %s739_s23, %s732_s27 }
  0x42   : > { %p736_p13 = pneg %p735_p8  ;;  %p742_p9 = por %p741_p7, %p740_p3 }
  0x44   : > { %p743_p11 = pnand %p742_p9, %p736_p13 }
  0x46   : > { %746 = shalt.err (!%p743_p11)
}
  0x47   : > { %s823_s30 = smov 128   ;;  %s824_s22 = smov 8  }
  0x48   : > { %633 = dma.hbm_to_vmem [thread:$0]  (!%p942_p10), %s940_s4, 1024, %s946_s25, %s948_s5, %s823_s30, %s823_s30, %s824_s22  }
  0x49   : > { %p1068_p0 = scmp.ne.s32.totalorder %s1063_s20, 0 }
  0x4a   : > { %s979_s6 = sand.u32 (!%p1068_p0), 1, %s809_s13   ;;  %p1069_p5 = scmp.ne.s32.totalorder (!%p1068_p0), %s1061_s18, 0 }
  0x4b   : > { %171 = sbr.rel (%p1068_p0) target bundleno = 355 (0x163), region = 32  ;;  %s508_s7 = sshll.u32 (!%p1068_p0), %s979_s6, 6 }
  0x4c   : > { %s174_s8 = scalar_lea.sflag (!%p1068_p0), [#allocation3], %s979_s6  ;;  %s983_s9 = scalar_lea.vmem (!%p1068_p0), [#allocation2], %s508_s7 }
  0x52   : > { %792 = dma.done.wait (%p1069_p5), %s174_s8, 1024  }
  0x53   : > { %794 = vsyncadd (%p1069_p5), %s174_s8, 4294966272  ;;  %p1070_p10 = scmp.eq.s32.totalorder %s869_s16, 0 }
  0x55   : > { %796 = dma.done.wait (%p1070_p10), [#allocation6], 1024   ;;  %p1071_p2 = pmov %p1070_p10 }
  0x56   : > { %v681_v0 = vld [vmem:[#allocation5] sm:$0xff]   ;;  %v682_v1 = vld [vmem:[#allocation5 + $0x8] sm:$0xff]   ;;  %v683_v2 = vld [vmem:[#allocation5 + $0x10] sm:$0xff]   ;;  %s510_s18 = sshll.u32 %s979_s6, 5  ;;  %s542_s5 = sshll.u32 %s869_s16, 9 }
  0x57   : > { %798 = vsyncadd (%p1071_p2), [#allocation6], 4294966272  ;;  %578 = vmatprep.subr.bf16.mxu0 %v681_v0  ;;  %602 = vmatprep.subr.bf16.mxu1 %v681_v0  ;;  %v684_v3 = vld [vmem:[#allocation5 + $0x18] sm:$0xff]   ;;  %v207_v4 = vld [vmem:[%s983_s9] sm:$0xff]  ;;  %s203_s25 = scalar_lea.vmem [#allocation7], %s510_s18  ;;  %s1011_s16 = scalar_lea.hbm %s1057_s3, %s542_s5 }
  0x58   : > { %579 = vmatpush3.bf16.msra.mxu0 %v681_v0  ;;  %610 = vmatpush3.bf16.msra.mxu1 %v681_v0  ;;  %v208_v5 = vld [vmem:[%s983_s9 + $0x8] sm:$0xff]  ;;  %v211_v6 = vld [vmem:[%s983_s9 + $0x20] sm:$0xff]  ;;  %v687_v12 = vld [vmem:[#allocation5 + $0x30] sm:$0xff]   ;;  %s417_s26 = sshll.u32 %s203_s25, 4  ;;  %s404_s27 = scalar_lea.sflag [#allocation4], %s979_s6  ;;  %s1006_s26 = int_to_ptr.vmem [resolvable:$true] %s417_s26 }
  0x59   : > { %580 = vmatprep.subr.bf16.mxu0 %v682_v1  ;;  %603 = vmatprep.subr.bf16.mxu1 %v682_v1  ;;  %v215_v7 = vpack.c.bf16 %v208_v5, %v207_v4  ;;  %v212_v8 = vld [vmem:[%s983_s9 + $0x28] sm:$0xff]  ;;  %v685_v10 = vld [vmem:[#allocation5 + $0x20] sm:$0xff]   ;;  %v688_v13 = vld [vmem:[#allocation5 + $0x38] sm:$0xff]   ;;  %s747_s28 = scalar_lea.vmem %s1006_s26, 512  ;;  %s825_s29 = smov [#allocation7]  }
  0x5a   : > { %v217_v9 = vpack.c.bf16 %v212_v8, %v211_v6  ;;  %v686_v11 = vld [vmem:[#allocation5 + $0x28] sm:$0xff]   ;;  %v209_v14 = vld [vmem:[%s983_s9 + $0x10] sm:$0xff]  ;;  %v210_v15 = vld [vmem:[%s983_s9 + $0x18] sm:$0xff]  ;;  %p748_p1 = scmp.ne.s32.totalorder %s1006_s26, %s747_s28  ;;  %s751_s23 = sshll.u32 %s825_s29, 4  ;;  %s752_s23 = int_to_ptr.vmem [resolvable:$false] %s751_s23 }
  0x5b   : > { %594 = vmatprep.mubr.bf16.mxu0 %v215_v7  ;;  %v213_v16 = vld [vmem:[%s983_s9 + $0x30] sm:$0xff]  ;;  %v214_v17 = vld [vmem:[%s983_s9 + $0x38] sm:$0xff]  ;;  %v216_v18 = vpack.c.bf16 %v210_v15, %v209_v14  ;;  %v511_v20 = vld [vmem:[%s1056_s2] ss:$0 sm:$0xff]  ;;  %s753_s30 = scalar_lea.vmem %s752_s23, 1024  ;;  %p754_p8 = scmp.lt.s32.totalorder %s1006_s26, %s752_s23 }
  0x5c   : > { %581 = vmatpush3.bf16.msra.mxu0 %v682_v1  ;;  %611 = vmatpush3.bf16.msra.mxu1 %v682_v1  ;;  %v218_v19 = vpack.c.bf16 %v214_v17, %v213_v16  ;;  %p749_p4 = pnand %p748_p1, %p931_p12  ;;  %p755_p13 = scmp.lt.s32.totalorder %s753_s30, %s747_s28 }
  0x5d   : > { %582 = vmatprep.subr.bf16.mxu0 %v683_v2  ;;  %604 = vmatprep.subr.bf16.mxu1 %v683_v2 }
  0x5e   : > { %598 = vmatprep.mubr.bf16.mxu1 %v217_v9  ;;  %p750_p6 = pneg %p749_p4  ;;  %p756_p3 = por %p755_p13, %p754_p8 }
  0x60   : > { %583 = vmatpush3.bf16.msra.mxu0 %v683_v2  ;;  %612 = vmatpush3.bf16.msra.mxu1 %v683_v2  ;;  %p757_p7 = pnand %p756_p3, %p750_p6 }
  0x61   : > { %584 = vmatprep.subr.bf16.mxu0 %v684_v3  ;;  %605 = vmatprep.subr.bf16.mxu1 %v684_v3 }
  0x64   : > { %585 = vmatpush3.bf16.msra.mxu0 %v684_v3  ;;  %613 = vmatpush3.bf16.msra.mxu1 %v684_v3 }
  0x65   : > { %586 = vmatprep.subr.bf16.mxu0 %v685_v10  ;;  %606 = vmatprep.subr.bf16.mxu1 %v685_v10 }
  0x68   : > { %587 = vmatpush3.bf16.msra.mxu0 %v685_v10  ;;  %614 = vmatpush3.bf16.msra.mxu1 %v685_v10 }
  0x69   : > { %588 = vmatprep.subr.bf16.mxu0 %v686_v11  ;;  %607 = vmatprep.subr.bf16.mxu1 %v686_v11 }
  0x6c   : > { %589 = vmatpush3.bf16.msra.mxu0 %v686_v11  ;;  %615 = vmatpush3.bf16.msra.mxu1 %v686_v11 }
  0x6d   : > { %590 = vmatprep.subr.bf16.mxu0 %v687_v12  ;;  %608 = vmatprep.subr.bf16.mxu1 %v687_v12 }
  0x70   : > { %591 = vmatpush3.bf16.msra.mxu0 %v687_v12  ;;  %616 = vmatpush3.bf16.msra.mxu1 %v687_v12 }
  0x71   : > { %592 = vmatprep.subr.bf16.mxu0 %v688_v13  ;;  %609 = vmatprep.subr.bf16.mxu1 %v688_v13 }
  0x74   : > { %593 = vmatpush3.bf16.msra.mxu0 %v688_v13  ;;  %617 = vmatpush3.bf16.msra.mxu1 %v688_v13 }
  0x77   : > { %595 = vmatmul.mubr.bf16.vlgmr.msra.gmra.mrb[0].mxu0 %v216_v18  ;;  %599 = vmatmul.mubr.bf16.vlgmr.msra.gmra.mrb[0].mxu1 %v218_v19 }
 0x14a   : > { %v596_v21 = vpop.f32.mrb[0].mxu0  ;;  %v600_v22 = vpop.f32.mrb[0].mxu1 }
 0x14b   : > { %v333_v23 = vadd.f32 %v596_v21, %v511_v20  ;;  %v349_v24 = vadd.f32 %v600_v22, %v511_v20  ;;  %v324_v25 = vpop.f32.mrb[1].mxu0  ;;  %v340_v26 = vpop.f32.mrb[1].mxu1 }
 0x14c   : > { %v325_v27 = vadd.f32 %v511_v20, %v324_v25  ;;  %v341_v28 = vadd.f32 %v511_v20, %v340_v26  ;;  %v597_v29 = vpop.f32.mrb[2].mxu0  ;;  %v601_v30 = vpop.f32.mrb[2].mxu1 }
 0x14d   : > { %v336_v31 = vadd.f32 %v597_v29, %v511_v20  ;;  %v352_v32 = vadd.f32 %v601_v30, %v511_v20  ;;  %v327_v33 = vpop.f32.mrb[3].mxu0  ;;  %v343_v34 = vpop.f32.mrb[3].mxu1  ;;  %v357_v37 = vmax.f32 %v333_v23, 0.0  ;;  %v361_v38 = vmax.f32 %v349_v24, 0.0 }
 0x14e   : > { %v328_v35 = vadd.f32 %v511_v20, %v327_v33  ;;  %v344_v36 = vadd.f32 %v511_v20, %v343_v34  ;;  %v355_v41 = vmax.f32 %v325_v27, 0.0  ;;  %v359_v42 = vmax.f32 %v341_v28, 0.0 }
 0x14f   : > { %v358_v39 = vmax.f32 %v336_v31, 0.0  ;;  %v362_v40 = vmax.f32 %v352_v32, 0.0 }
 0x150   : > { %v356_v43 = vmax.f32 %v328_v35, 0.0  ;;  %v360_v44 = vmax.f32 %v344_v36, 0.0 }
 0x151   : > { %v551_v45 = vpack.c.bf16 %v358_v39, %v357_v37  ;;  %v561_v46 = vpack.c.bf16 %v362_v40, %v361_v38 }
 0x152   : > { %v546_v47 = vpack.c.bf16 %v356_v43, %v355_v41  ;;  %v556_v48 = vpack.c.bf16 %v360_v44, %v359_v42 }
 0x153   : > { %563 = vst [vmem:[%s203_s25 + $0x8] sm:$0xff] %v551_v45   ;;  %565 = vst [vmem:[%s203_s25 + $0x18] sm:$0xff] %v561_v46  }
 0x154   : > { %547 = vst [vmem:[%s203_s25] sm:$0xff] %v546_v47   ;;  %564 = vst [vmem:[%s203_s25 + $0x10] sm:$0xff] %v556_v48  }
 0x155   : > { %760 = shalt.err (!%p757_p7)
}
 0x156   : > { %s761_s22 = scalar_lea.hbm %s1011_s16, 512  ;;  %s765_s9 = scalar_lea.hbm %s1057_s3, 4096 }
 0x157   : > { %p762_p9 = scmp.ne.s32.totalorder %s1011_s16, %s761_s22  ;;  %p766_p5 = scmp.lt.u32.totalorder %s1011_s16, %s1057_s3 }
 0x158   : > { %p767_p10 = scmp.lt.u32.totalorder %s765_s9, %s761_s22  ;;  %p769_p1 = scmp.lt.u32.totalorder %s761_s22, %s1011_s16 }
 0x159   : > { %p763_p11 = pnand %p762_p9, %p931_p12 }
 0x15a   : > { %p768_p2 = por %p767_p10, %p766_p5 }
 0x15b   : > { %p764_p0 = pneg %p763_p11 }
 0x15c   : > { %p770_p4 = por %p769_p1, %p768_p2 }
 0x15e   : > { %p771_p6 = pnand %p770_p4, %p764_p0 }
 0x160   : > { %774 = shalt.err (!%p771_p6)
}
 0x161   : > { %s826_s4 = smov 64   ;;  %s827_s25 = smov 4  }
 0x162   : > { %624 = dma.vmem_to_hbm [thread:$0]  (%p931_p12), %s1006_s26, 512, %s1011_s16, %s404_s27, %s826_s4, %s826_s4, %s827_s25  }
 0x163 PF: > { %p641_p8 = scmp.ge.s32.totalorder %s817_s15, 2  ;;  %s432_s5 = sand.u32 1, %s805_s12  }
 0x164   : > { %p1072_p13 = scmp.ne.s32.totalorder %s1062_s19, 0  ;;  %s433_s10 = scalar_lea.sflag [#allocation4], %s432_s5 }
 0x166   : > { %p635_p3 = pnand %p641_p8, %p1072_p13 }
 0x168   : > { %800 = dma.done.wait (!%p635_p3), %s433_s10, 512  }
 0x169   : > { %802 = vsyncadd (!%p635_p3), %s433_s10, 4294966784  ;;  %p17_p7 = scmp.ge.s32.totalorder %s901_s24, 10   ;;  %s1073_s12 = smov %s809_s13 }
 0x16a   : > { %s1074_s13 = smov %s813_s14  ;;  %s1075_s14 = smov %s927_s17 }
 0x16b   : > { %s1076_s15 = smov %s901_s24  ;;  %19 = sbr.rel (!%p17_p7) target bundleno = 6 (0x6), region = 81 }
 0x172   :  { %438 = vsyncpa [#allocation3], 1 }
 0x173   :  { %440 = vsyncpa [#allocation3 + $0x1], 1 }
 0x174   :  { %441 = vsyncpa [#allocation6], 1 }
 0x175   :  { %442 = vsyncpa [#allocation4], 1 }
 0x176   :  { %444 = vsyncpa [#allocation4 + $0x1], 1 }

</bundles_post_ra>
